<compile_context>
chip_gen: v7x
topology: tpu7x:2x2x1
jax: 0.10.0
libtpu: 0.0.40
codegen_flags: <defaults>
</compile_context>

<pallas_src>
import jax
import jax.numpy as jnp
from jax.experimental import pallas as pl
from jax.experimental.pallas import tpu as pltpu


# ---------------- hyper-params (module __init__ equivalents) ----------------
DIM = 4          # input channels
HEADS = 2
DIM_HEAD = 8
HIDDEN = HEADS * DIM_HEAD     # 16
SCALE = DIM_HEAD ** -0.5
GN_EPS = 1e-5


# ------------------------------- Pallas kernel ------------------------------
def linear_attention_kernel(x_ref, wqkvT_ref, woutT_ref, params_ref, o_ref, attn_ref):
    # x_ref:      [1, C, N]        one batch element per grid step (lane axis = N)
    # wqkvT_ref:  [3*HIDDEN, C]    transposed 1x1-conv weight for q/k/v projection
    # woutT_ref:  [C, HIDDEN]      transposed 1x1-conv weight for to_out
    # params_ref: [C, 3]           packed per-channel params: (b_out | gn_w | gn_b)
    # o_ref:      [1, C, N]
    # attn_ref:   [HIDDEN, N]      VMEM scratch holding all head outputs (head-major rows)
    x = x_ref[0]                                                    # [C, N]

    # 1x1 conv (no bias) == matmul over channels: [3*HIDDEN, C] @ [C, N] -> [3*HIDDEN, N]
    qkv = jnp.dot(wqkvT_ref[...], x, preferred_element_type=jnp.float32)

    for h in range(HEADS):                                          # static unroll (HEADS=2)
        r0 = h * DIM_HEAD
        q_h = qkv[r0:r0 + DIM_HEAD, :]                              # [Dh, N]
        k_h = qkv[HIDDEN + r0:HIDDEN + r0 + DIM_HEAD, :]            # [Dh, N]
        v_h = qkv[2 * HIDDEN + r0:2 * HIDDEN + r0 + DIM_HEAD, :]    # [Dh, N]

        # torch: q.softmax(dim=-2) over dim_head -> here the row (sublane) axis; scaled
        q_e = jnp.exp(q_h - jnp.max(q_h, axis=0, keepdims=True))
        q_inv = pl.reciprocal(jnp.sum(q_e, axis=0, keepdims=True), approx=True)
        q_p = q_e * (q_inv * SCALE)

        # torch: k.softmax(dim=-1) over spatial N -> here the lane axis
        k_e = jnp.exp(k_h - jnp.max(k_h, axis=1, keepdims=True))
        k_inv = pl.reciprocal(jnp.sum(k_e, axis=1, keepdims=True), approx=True)
        k_p = k_e * k_inv

        # ctx[d, e] = sum_n k[d, n] * v[e, n]   (lane-axis contraction, depth N) -> [Dh, Dh]
        ctx = jax.lax.dot_general(k_p, v_h, (((1,), (1,)), ((), ())),
                                  preferred_element_type=jnp.float32)
        # out[e, n] = sum_d ctx[d, e] * q[d, n] -> [Dh, N]
        out_h = jax.lax.dot_general(ctx, q_p, (((0,), (0,)), ((), ())),
                                    preferred_element_type=jnp.float32)
        attn_ref[r0:r0 + DIM_HEAD, :] = out_h                       # sublane-aligned rows

    # to_out: 1x1 conv with bias: [C, HIDDEN] @ [HIDDEN, N] + b -> [C, N]
    b_out = params_ref[:, 0:1]                                      # [C, 1]
    gn_w = params_ref[:, 1:2]                                       # [C, 1]
    gn_b = params_ref[:, 2:3]                                       # [C, 1]
    y = jnp.dot(woutT_ref[...], attn_ref[...],
                preferred_element_type=jnp.float32) + b_out         # [C, N]

    # GroupNorm(1, dim): normalize over the whole (C, N) sample, per-channel affine
    mu = jnp.mean(y)
    var = jnp.mean((y - mu) ** 2)
    y_norm = (y - mu) * jax.lax.rsqrt(var + GN_EPS)
    o_ref[0] = y_norm * gn_w + gn_b


# --------------------------------- wrapper ----------------------------------
@jax.jit
def linear_attention(x_nchw, w_qkv, w_out, b_out, gn_w, gn_b):
    B, C, H, W = x_nchw.shape
    N = H * W
    # NCHW -> [B, C, N]: free reshape, no transpose (spatial on the lane axis).
    x_f = x_nchw.reshape(B, C, N)
    wqkvT = w_qkv.T                                               # [3*HIDDEN, C]
    woutT = w_out.T                                               # [C, HIDDEN]
    params = jnp.stack([b_out[0], gn_w[0], gn_b[0]], axis=1)      # [C, 3]

    out_f = pl.pallas_call(
        linear_attention_kernel,
        out_shape=jax.ShapeDtypeStruct((B, C, N), jnp.float32),
        grid_spec=pltpu.PrefetchScalarGridSpec(
            num_scalar_prefetch=0,
            grid=(B,),
            in_specs=[
                pl.BlockSpec((1, C, N), lambda b: (b, 0, 0)),
                pl.BlockSpec((3 * HIDDEN, C), lambda b: (0, 0)),
                pl.BlockSpec((C, HIDDEN), lambda b: (0, 0)),
                pl.BlockSpec((C, 3), lambda b: (0, 0)),
            ],
            out_specs=pl.BlockSpec((1, C, N), lambda b: (b, 0, 0)),
            scratch_shapes=[pltpu.VMEM((HIDDEN, N), jnp.float32)],
        ),
        # Batch elements are fully independent -> parallel (2x on v7x's two TCs,
        # neutral on single-TC v5e/v6e). For very small B on v5e/v6e one could also
        # fold B into a single grid step; kept as-is for cross-generation portability.
        compiler_params=pltpu.CompilerParams(
            dimension_semantics=("parallel",)),
    )(x_f, wqkvT, woutT, params)

    # [B, C, N] -> NCHW: free reshape.
    return out_f.reshape(B, C, H, W)


# -------------------------- pure-JAX reference ------------------------------
def linear_attention_ref(x_nchw, w_qkv, w_out, b_out, gn_w, gn_b):
    B, C, H, W = x_nchw.shape
    N = H * W
    x_f = jnp.transpose(x_nchw, (0, 2, 3, 1)).reshape(B, N, C)
    qkv = x_f @ w_qkv                                             # [B, N, 3*HIDDEN]
    q, k, v = jnp.split(qkv, 3, axis=-1)                          # each [B, N, HIDDEN]

    def split_heads(t):                                           # -> [B, heads, N, Dh]
        return t.reshape(B, N, HEADS, DIM_HEAD).transpose(0, 2, 1, 3)

    q, k, v = map(split_heads, (q, k, v))
    q = jax.nn.softmax(q, axis=-1) * SCALE                        # softmax over dim_head
    k = jax.nn.softmax(k, axis=-2)                                # softmax over spatial
    ctx = jnp.einsum("bhnd,bhne->bhde", k, v)
    out = jnp.einsum("bhde,bhnd->bhne", ctx, q)                   # [B, heads, N, Dh]
    out = out.transpose(0, 2, 1, 3).reshape(B, N, HIDDEN)
    y = out @ w_out + b_out[0]                                    # [B, N, C]
    mu = jnp.mean(y, axis=(1, 2), keepdims=True)
    var = jnp.mean((y - mu) ** 2, axis=(1, 2), keepdims=True)
    y = (y - mu) / jnp.sqrt(var + GN_EPS) * gn_w[0] + gn_b[0]
    return jnp.transpose(y.reshape(B, H, W, C), (0, 3, 1, 2))


# ----------------------------------- main ------------------------------------
if __name__ == "__main__":
    key = jax.random.PRNGKey(0)
    k_x, k_qkv, k_out, k_b, k_gw, k_gb = jax.random.split(key, 6)

    B, H, W = 2, 16, 16
    x = jax.random.normal(k_x, (B, DIM, H, W), dtype=jnp.float32)      # NCHW like PyTorch

    # Deterministic synthetic parameters (shapes match the PyTorch 1x1 convs / GroupNorm).
    w_qkv = 0.2 * jax.random.normal(k_qkv, (DIM, 3 * HIDDEN), jnp.float32)   # Conv2d(dim, 3*hidden, 1, bias=False)
    w_out = 0.2 * jax.random.normal(k_out, (HIDDEN, DIM), jnp.float32)       # Conv2d(hidden, dim, 1)
    b_out = 0.1 * jax.random.normal(k_b, (1, DIM), jnp.float32)
    gn_w = 1.0 + 0.1 * jax.random.normal(k_gw, (1, DIM), jnp.float32)        # GroupNorm(1, dim) affine
    gn_b = 0.1 * jax.random.normal(k_gb, (1, DIM), jnp.float32)

    out = linear_attention(x, w_qkv, w_out, b_out, gn_w, gn_b)
    out = jax.block_until_ready(out)

    ref = linear_attention_ref(x, w_qkv, w_out, b_out, gn_w, gn_b)
    assert out.shape == (B, DIM, H, W)
    # Tolerance 2e-3 (not 1e-4) because the kernel uses the EUP approximate reciprocal
    # for the softmax denominators; semantics are otherwise exact f32.
    assert jnp.allclose(out, ref, atol=2e-3, rtol=2e-3), \
        f"mismatch: max abs err {jnp.max(jnp.abs(out - ref))}"

    print("KERNEL_OK")
</pallas_src>

<mosaic_0001>
module attributes {stable_mosaic.version = 11 : i64} {
  func.func @linear_attention_kernel(%arg0: i32, %arg1: memref<1x4x256xf32, #tpu.memory_space<vmem>>, %arg2: memref<48x4xf32, #tpu.memory_space<vmem>>, %arg3: memref<4x16xf32, #tpu.memory_space<vmem>>, %arg4: memref<4x3xf32, #tpu.memory_space<vmem>>, %arg5: memref<1x4x256xf32, #tpu.memory_space<vmem>>, %arg6: memref<16x256xf32, #tpu.memory_space<vmem>>) attributes {dimension_semantics = [#tpu.dimension_semantics<parallel>], iteration_bounds = array<i64: 2>, scalar_prefetch = 0 : i64, scratch_operands = 1 : i64, tpu.core_type = #tpu.core_type<tc>, window_params = [{transform_indices = @transform_0, window_bounds = array<i64: 1, 4, 256>}, {pipeline_mode = #tpu.pipeline_mode<synchronous>, transform_indices = @transform_1, window_bounds = array<i64: 48, 4>}, {pipeline_mode = #tpu.pipeline_mode<synchronous>, transform_indices = @transform_2, window_bounds = array<i64: 4, 16>}, {pipeline_mode = #tpu.pipeline_mode<synchronous>, transform_indices = @transform_3, window_bounds = array<i64: 4, 3>}, {transform_indices = @transform_4, window_bounds = array<i64: 1, 4, 256>}]} {
    %c0 = arith.constant 0 : index
    %c0_0 = arith.constant 0 : index
    %c0_1 = arith.constant 0 : index
    %0 = vector.load %arg1[%c0, %c0_0, %c0_1] : memref<1x4x256xf32, #tpu.memory_space<vmem>>, vector<1x4x256xf32>
    %1 = vector.shape_cast %0 : vector<1x4x256xf32> to vector<4x256xf32>
    %c0_2 = arith.constant 0 : index
    %c0_3 = arith.constant 0 : index
    %2 = vector.load %arg2[%c0_2, %c0_3] : memref<48x4xf32, #tpu.memory_space<vmem>>, vector<48x4xf32>
    %cst = arith.constant dense<0.000000e+00> : vector<48x256xf32>
    %3 = tpu.matmul %2, %1, %cst {dimension_numbers = #tpu.dot_dimension_numbers<[1], [0], [0], [1], [0, 0, 1, 1], [], []>} : vector<48x4xf32>, vector<4x256xf32>, vector<48x256xf32> -> vector<48x256xf32>
    %4 = vector.extract_strided_slice %3 {offsets = [0, 0], sizes = [8, 256], strides = [1, 1]} : vector<48x256xf32> to vector<8x256xf32>
    %5 = vector.extract_strided_slice %3 {offsets = [16, 0], sizes = [8, 256], strides = [1, 1]} : vector<48x256xf32> to vector<8x256xf32>
    %6 = vector.extract_strided_slice %3 {offsets = [32, 0], sizes = [8, 256], strides = [1, 1]} : vector<48x256xf32> to vector<8x256xf32>
    %cst_4 = arith.constant dense<0xFF800000> : vector<256xf32>
    %7 = vector.multi_reduction <maximumf>, %4, %cst_4 [0] : vector<8x256xf32> to vector<256xf32>
    %8 = vector.shape_cast %7 : vector<256xf32> to vector<1x256xf32>
    %9 = vector.broadcast %8 : vector<1x256xf32> to vector<8x256xf32>
    %10 = arith.subf %4, %9 : vector<8x256xf32>
    %11 = math.exp %10 : vector<8x256xf32>
    %cst_5 = arith.constant dense<0.000000e+00> : vector<256xf32>
    %12 = vector.multi_reduction <add>, %11, %cst_5 [0] : vector<8x256xf32> to vector<256xf32>
    %13 = vector.shape_cast %12 : vector<256xf32> to vector<1x256xf32>
    %14 = tpu.reciprocal %13 {approx = true} : vector<1x256xf32> -> vector<1x256xf32>
    %cst_6 = arith.constant 0.353553385 : f32
    %15 = vector.broadcast %cst_6 : f32 to vector<1x256xf32>
    %16 = arith.mulf %14, %15 : vector<1x256xf32>
    %17 = vector.broadcast %16 : vector<1x256xf32> to vector<8x256xf32>
    %18 = arith.mulf %11, %17 : vector<8x256xf32>
    %cst_7 = arith.constant dense<0xFF800000> : vector<8xf32>
    %19 = vector.multi_reduction <maximumf>, %5, %cst_7 [1] : vector<8x256xf32> to vector<8xf32>
    %20 = vector.shape_cast %19 : vector<8xf32> to vector<8x1xf32>
    %21 = vector.broadcast %20 : vector<8x1xf32> to vector<8x256xf32>
    %22 = arith.subf %5, %21 : vector<8x256xf32>
    %23 = math.exp %22 : vector<8x256xf32>
    %cst_8 = arith.constant dense<0.000000e+00> : vector<8xf32>
    %24 = vector.multi_reduction <add>, %23, %cst_8 [1] : vector<8x256xf32> to vector<8xf32>
    %25 = vector.shape_cast %24 : vector<8xf32> to vector<8x1xf32>
    %26 = tpu.reciprocal %25 {approx = true} : vector<8x1xf32> -> vector<8x1xf32>
    %27 = vector.broadcast %26 : vector<8x1xf32> to vector<8x256xf32>
    %28 = arith.mulf %23, %27 : vector<8x256xf32>
    %cst_9 = arith.constant dense<0.000000e+00> : vector<8x8xf32>
    %29 = tpu.matmul %28, %6, %cst_9 {dimension_numbers = #tpu.dot_dimension_numbers<[1], [1], [0], [0], [0, 0, 1, 0], [], []>} : vector<8x256xf32>, vector<8x256xf32>, vector<8x8xf32> -> vector<8x8xf32>
    %cst_10 = arith.constant dense<0.000000e+00> : vector<8x256xf32>
    %30 = tpu.matmul %29, %18, %cst_10 {dimension_numbers = #tpu.dot_dimension_numbers<[0], [0], [1], [1], [0, 1, 1, 1], [], []>} : vector<8x8xf32>, vector<8x256xf32>, vector<8x256xf32> -> vector<8x256xf32>
    %c0_11 = arith.constant 0 : index
    %c0_12 = arith.constant 0 : index
    %31 = vector.load %arg6[%c0_11, %c0_12] : memref<16x256xf32, #tpu.memory_space<vmem>>, vector<8x256xf32>
    tpu.vector_store %arg6[%c0_11, %c0_12], %30 {strides = array<i32>} : memref<16x256xf32, #tpu.memory_space<vmem>>, vector<8x256xf32>,
    %32 = vector.extract_strided_slice %3 {offsets = [8, 0], sizes = [8, 256], strides = [1, 1]} : vector<48x256xf32> to vector<8x256xf32>
    %33 = vector.extract_strided_slice %3 {offsets = [24, 0], sizes = [8, 256], strides = [1, 1]} : vector<48x256xf32> to vector<8x256xf32>
    %34 = vector.extract_strided_slice %3 {offsets = [40, 0], sizes = [8, 256], strides = [1, 1]} : vector<48x256xf32> to vector<8x256xf32>
    %cst_13 = arith.constant dense<0xFF800000> : vector<256xf32>
    %35 = vector.multi_reduction <maximumf>, %32, %cst_13 [0] : vector<8x256xf32> to vector<256xf32>
    %36 = vector.shape_cast %35 : vector<256xf32> to vector<1x256xf32>
    %37 = vector.broadcast %36 : vector<1x256xf32> to vector<8x256xf32>
    %38 = arith.subf %32, %37 : vector<8x256xf32>
    %39 = math.exp %38 : vector<8x256xf32>
    %cst_14 = arith.constant dense<0.000000e+00> : vector<256xf32>
    %40 = vector.multi_reduction <add>, %39, %cst_14 [0] : vector<8x256xf32> to vector<256xf32>
    %41 = vector.shape_cast %40 : vector<256xf32> to vector<1x256xf32>
    %42 = tpu.reciprocal %41 {approx = true} : vector<1x256xf32> -> vector<1x256xf32>
    %cst_15 = arith.constant 0.353553385 : f32
    %43 = vector.broadcast %cst_15 : f32 to vector<1x256xf32>
    %44 = arith.mulf %42, %43 : vector<1x256xf32>
    %45 = vector.broadcast %44 : vector<1x256xf32> to vector<8x256xf32>
    %46 = arith.mulf %39, %45 : vector<8x256xf32>
    %cst_16 = arith.constant dense<0xFF800000> : vector<8xf32>
    %47 = vector.multi_reduction <maximumf>, %33, %cst_16 [1] : vector<8x256xf32> to vector<8xf32>
    %48 = vector.shape_cast %47 : vector<8xf32> to vector<8x1xf32>
    %49 = vector.broadcast %48 : vector<8x1xf32> to vector<8x256xf32>
    %50 = arith.subf %33, %49 : vector<8x256xf32>
    %51 = math.exp %50 : vector<8x256xf32>
    %cst_17 = arith.constant dense<0.000000e+00> : vector<8xf32>
    %52 = vector.multi_reduction <add>, %51, %cst_17 [1] : vector<8x256xf32> to vector<8xf32>
    %53 = vector.shape_cast %52 : vector<8xf32> to vector<8x1xf32>
    %54 = tpu.reciprocal %53 {approx = true} : vector<8x1xf32> -> vector<8x1xf32>
    %55 = vector.broadcast %54 : vector<8x1xf32> to vector<8x256xf32>
    %56 = arith.mulf %51, %55 : vector<8x256xf32>
    %cst_18 = arith.constant dense<0.000000e+00> : vector<8x8xf32>
    %57 = tpu.matmul %56, %34, %cst_18 {dimension_numbers = #tpu.dot_dimension_numbers<[1], [1], [0], [0], [0, 0, 1, 0], [], []>} : vector<8x256xf32>, vector<8x256xf32>, vector<8x8xf32> -> vector<8x8xf32>
    %cst_19 = arith.constant dense<0.000000e+00> : vector<8x256xf32>
    %58 = tpu.matmul %57, %46, %cst_19 {dimension_numbers = #tpu.dot_dimension_numbers<[0], [0], [1], [1], [0, 1, 1, 1], [], []>} : vector<8x8xf32>, vector<8x256xf32>, vector<8x256xf32> -> vector<8x256xf32>
    %c8 = arith.constant 8 : index
    %c0_20 = arith.constant 0 : index
    %59 = vector.load %arg6[%c8, %c0_20] : memref<16x256xf32, #tpu.memory_space<vmem>>, vector<8x256xf32>
    tpu.vector_store %arg6[%c8, %c0_20], %58 {strides = array<i32>} : memref<16x256xf32, #tpu.memory_space<vmem>>, vector<8x256xf32>,
    %c0_21 = arith.constant 0 : index
    %c0_22 = arith.constant 0 : index
    %60 = vector.load %arg4[%c0_21, %c0_22] : memref<4x3xf32, #tpu.memory_space<vmem>>, vector<4x1xf32>
    %c0_23 = arith.constant 0 : index
    %c1 = arith.constant 1 : index
    %61 = vector.load %arg4[%c0_23, %c1] : memref<4x3xf32, #tpu.memory_space<vmem>>, vector<4x1xf32>
    %c0_24 = arith.constant 0 : index
    %c2 = arith.constant 2 : index
    %62 = vector.load %arg4[%c0_24, %c2] : memref<4x3xf32, #tpu.memory_space<vmem>>, vector<4x1xf32>
    %c0_25 = arith.constant 0 : index
    %c0_26 = arith.constant 0 : index
    %63 = vector.load %arg3[%c0_25, %c0_26] : memref<4x16xf32, #tpu.memory_space<vmem>>, vector<4x16xf32>
    %c0_27 = arith.constant 0 : index
    %c0_28 = arith.constant 0 : index
    %64 = vector.load %arg6[%c0_27, %c0_28] : memref<16x256xf32, #tpu.memory_space<vmem>>, vector<16x256xf32>
    %cst_29 = arith.constant dense<0.000000e+00> : vector<4x256xf32>
    %65 = tpu.matmul %63, %64, %cst_29 {dimension_numbers = #tpu.dot_dimension_numbers<[1], [0], [0], [1], [0, 0, 1, 1], [], []>} : vector<4x16xf32>, vector<16x256xf32>, vector<4x256xf32> -> vector<4x256xf32>
    %66 = vector.broadcast %60 : vector<4x1xf32> to vector<4x256xf32>
    %67 = arith.addf %65, %66 : vector<4x256xf32>
    %68 = vector.shape_cast %67 : vector<4x256xf32> to vector<1x4x256xf32>
    %cst_30 = arith.constant dense<0.000000e+00> : vector<1xf32>
    %69 = vector.multi_reduction <add>, %68, %cst_30 [1, 2] : vector<1x4x256xf32> to vector<1xf32>
    %70 = vector.shape_cast %69 : vector<1xf32> to vector<1x1x1xf32>
    %71 = vector.extract %70[0, 0, 0] : f32 from vector<1x1x1xf32>
    %cst_31 = arith.constant 1.024000e+03 : f32
    %72 = arith.divf %71, %cst_31 : f32
    %73 = vector.broadcast %72 : f32 to vector<4x256xf32>
    %74 = arith.subf %67, %73 : vector<4x256xf32>
    %75 = arith.mulf %74, %74 : vector<4x256xf32>
    %76 = vector.shape_cast %75 : vector<4x256xf32> to vector<1x4x256xf32>
    %cst_32 = arith.constant dense<0.000000e+00> : vector<1xf32>
    %77 = vector.multi_reduction <add>, %76, %cst_32 [1, 2] : vector<1x4x256xf32> to vector<1xf32>
    %78 = vector.shape_cast %77 : vector<1xf32> to vector<1x1x1xf32>
    %79 = vector.extract %78[0, 0, 0] : f32 from vector<1x1x1xf32>
    %cst_33 = arith.constant 1.024000e+03 : f32
    %80 = arith.divf %79, %cst_33 : f32
    %81 = vector.broadcast %72 : f32 to vector<4x256xf32>
    %82 = arith.subf %67, %81 : vector<4x256xf32>
    %cst_34 = arith.constant 9.99999974E-6 : f32
    %83 = arith.addf %80, %cst_34 : f32
    %84 = math.rsqrt %83 : f32
    %85 = vector.broadcast %84 : f32 to vector<4x256xf32>
    %86 = arith.mulf %82, %85 : vector<4x256xf32>
    %87 = vector.broadcast %61 : vector<4x1xf32> to vector<4x256xf32>
    %88 = arith.mulf %86, %87 : vector<4x256xf32>
    %89 = vector.broadcast %62 : vector<4x1xf32> to vector<4x256xf32>
    %90 = arith.addf %88, %89 : vector<4x256xf32>
    %c0_35 = arith.constant 0 : index
    %c0_36 = arith.constant 0 : index
    %c0_37 = arith.constant 0 : index
    %91 = vector.load %arg5[%c0_35, %c0_36, %c0_37] : memref<1x4x256xf32, #tpu.memory_space<vmem>>, vector<1x4x256xf32>
    %92 = vector.shape_cast %91 : vector<1x4x256xf32> to vector<4x256xf32>
    %93 = vector.shape_cast %90 : vector<4x256xf32> to vector<1x4x256xf32>
    tpu.vector_store %arg5[%c0_35, %c0_36, %c0_37], %93 {strides = array<i32>} : memref<1x4x256xf32, #tpu.memory_space<vmem>>, vector<1x4x256xf32>,
    return
  }
  func.func @transform_0(%arg0: i32) -> (i32, i32, i32) {
    %c0_i32 = arith.constant 0 : i32
    %c0_i32_0 = arith.constant 0 : i32
    %c0_i32_1 = arith.constant 0 : i32
    return %arg0, %c0_i32, %c0_i32_0 : i32, i32, i32
  }
  func.func @transform_1(%arg0: i32) -> (i32, i32) {
    %c0_i32 = arith.constant 0 : i32
    %c0_i32_0 = arith.constant 0 : i32
    %c0_i32_1 = arith.constant 0 : i32
    return %c0_i32, %c0_i32_0 : i32, i32
  }
  func.func @transform_2(%arg0: i32) -> (i32, i32) {
    %c0_i32 = arith.constant 0 : i32
    %c0_i32_0 = arith.constant 0 : i32
    %c0_i32_1 = arith.constant 0 : i32
    return %c0_i32, %c0_i32_0 : i32, i32
  }
  func.func @transform_3(%arg0: i32) -> (i32, i32) {
    %c0_i32 = arith.constant 0 : i32
    %c0_i32_0 = arith.constant 0 : i32
    %c0_i32_1 = arith.constant 0 : i32
    return %c0_i32, %c0_i32_0 : i32, i32
  }
  func.func @transform_4(%arg0: i32) -> (i32, i32, i32) {
    %c0_i32 = arith.constant 0 : i32
    %c0_i32_0 = arith.constant 0 : i32
    %c0_i32_1 = arith.constant 0 : i32
    return %arg0, %c0_i32, %c0_i32_0 : i32, i32, i32
  }
}

</mosaic_0001>

<bundles_post_ra>
// kernel: linear_attention.1
= control target key start
LH: loop header
LB: loop body
LE: loop exit
PB: predicated region body
PF: predicated region fallthrough
CT: control target
= control target key end

     0   :  { %s1109_s15 = smov 0   ;;  %s1203_s0 = inlined_call_operand.vmem [shape: f32[2,4,256], index: 0, kind: input, shape index: {}]   ;;  %s1204_s1 = inlined_call_operand.vmem [shape: f32[48,4], index: 1, kind: input, shape index: {}]   ;;  %s1205_s2 = inlined_call_operand.vmem [shape: f32[4,16], index: 2, kind: input, shape index: {}]   ;;  %s1206_s3 = inlined_call_operand.vmem [shape: f32[4,3], index: 3, kind: input, shape index: {}]   ;;  %s1207_s4 = inlined_call_operand.vmem [shape: f32[2,4,256], index: 4, kind: output, shape index: {}]  }
   0x1 LB: > { %s991_s16 = sadd.s32 4294967295, %s1078_s15   ;;  %p995_p0 = scmp.ge.s32.totalorder %s1078_s15, 1  ;;  %s1078_s15 = sphi %s1109_s15, %s14_s15  }
   0x2   : > { %p162_p1 = scmp.lt.s32.totalorder %s1078_s15, 3 }
   0x4   : > { %p163_p2 = pnand %p995_p0, %p162_p1 }
   0x5   : > { %p188_p3 = scmp.lt.s32.totalorder (!%p163_p2), %s991_s16, 1  ;;  %v1080_v0 = vmov (!%p163_p2), 0.0   ;;  %vm226_vm0 = vcmask (!%p163_p2), 1043456   ;;  %v199_v3 = vld [vmem:[%s1204_s1] sm:$0xff] (!%p163_p2)  ;;  %vm207_vm1 = vcmask (!%p163_p2), 31744   ;;  %v200_v4 = vld [vmem:[%s1204_s1 + $0x8] sm:$0xff] (!%p163_p2) }
   0x6   : > { %166 = sbr.rel (%p163_p2) target bundleno = 2177 (0x881), region = 36  ;;  %295 = vmatprep.mubr.f32.mxu0 (!%p163_p2), %v1080_v0  ;;  %v201_v5 = vld [vmem:[%s1204_s1 + $0x10] sm:$0xff] (!%p163_p2)  ;;  %v202_v6 = vld [vmem:[%s1204_s1 + $0x18] sm:$0xff] (!%p163_p2)  ;;  %v203_v7 = vld [vmem:[%s1204_s1 + $0x20] sm:$0xff] (!%p163_p2)  ;;  %vm485_vm2 = vcmask (!%p163_p2), 64512   ;;  %vm802_vm3 = vcmask (!%p163_p2), 130048  }
   0x7   : > { %v204_v54 = vld [vmem:[%s1204_s1 + $0x28] sm:$0xff] (!%p163_p2) }
   0xd   : > { %s1209_s16 = smov (!%p188_p3, %s991_s16), 1 }
   0xe   : > { %s1013_s17 = sshll.u32 %s1209_s16, 3 }
   0xf   : > { %s192_s20 = scalar_lea.vmem %s1203_s0, %s1013_s17  ;;  %s197_s22 = scalar_lea.vmem %s1207_s4, %s1013_s17 }
  0x10   : > { %v198_v1 = vld [vmem:[%s192_s20] sm:$0xff] }
  0x11   : > { %v206_v2 = vcombine.high %v198_v1, %v198_v1 }
  0x13   : > { %1000 = vmatprep.subr.msk.mxu0 %vm226_vm0, %v206_v2 }
  0x14   : > { %1001 = vmatpush1.msk.msra.mxu0 %vm226_vm0, %v198_v1 }
  0x15   : > { %1002 = vmatmul.mubr.msk.f32.vlgmr.msra.gmra.mrb[0].mxu0 %vm207_vm1, %v199_v3 }
  0x16   : > { %301 = vmatprep.mubr.f32.mxu0 %v1080_v0 }
  0x19   : > { %1003 = vmatmul.mubr.msk.f32.gmra.mrb[2].mxu0 %vm207_vm1, %v200_v4 }
  0x1a   : > { %307 = vmatprep.mubr.f32.mxu0 %v1080_v0 }
  0x1d   : > { %1004 = vmatmul.mubr.msk.f32.gmra.mrb[4].mxu0 %vm207_vm1, %v201_v5 }
  0x1e   : > { %313 = vmatprep.mubr.f32.mxu0 %v1080_v0 }
  0x21   : > { %1005 = vmatmul.mubr.msk.f32.gmra.mrb[6].mxu0 %vm207_vm1, %v202_v6 }
  0x22   : > { %319 = vmatprep.mubr.f32.mxu0 %v1080_v0 }
  0x25   : > { %1006 = vmatmul.mubr.msk.f32.gmra.mrb[8].mxu0 %vm207_vm1, %v203_v7 }
  0x26   : > { %325 = vmatprep.mubr.f32.mxu0 %v1080_v0 }
  0x29   : > { %1007 = vmatmul.mubr.msk.f32.gmra.mrb[10].mxu0 %vm207_vm1, %v204_v54 }
  0xe8   : > { %v1153_v8 = vpop.f32.mrb[0].mxu0 }
  0xe9   : > { %v299_v9 = vpop.f32.mrb[1].mxu0  ;;  %v332_v55 = vrot.slane %v1153_v8, 4 }
  0xea   : > { %v338_v10 = vrot.slane %v299_v9, 4 }
  0xeb   : > { %v333_v56 = vmax.f32 %v1153_v8, %v332_v55 }
  0xec   : > { %v339_v11 = vmax.f32 %v299_v9, %v338_v10  ;;  %v1155_v12 = vpop.f32.mrb[2].mxu0 }
  0xed   : > { %v1157_v13 = vpop.f32.mrb[3].mxu0  ;;  %v334_v57 = vrot.slane %v333_v56, 2 }
  0xee   : > { %v340_v14 = vrot.slane %v339_v11, 2 }
  0xef   : > { %v335_v58 = vmax.f32 %v333_v56, %v334_v57 }
  0xf0   : > { %v341_v15 = vmax.f32 %v339_v11, %v340_v14  ;;  %v309_v16 = vpop.f32.mrb[4].mxu0 }
  0xf1   : > { %v311_v17 = vpop.f32.mrb[5].mxu0  ;;  %v336_v59 = vrot.slane %v335_v58, 1 }
  0xf2   : > { %v342_v18 = vrot.slane %v341_v15, 1  ;;  %v368_v19 = vmax.f32 %v309_v16, %v311_v17 }
  0xf3   : > { %v337_v60 = vmax.f32 %v335_v58, %v336_v59 }
  0xf4   : > { %v343_v20 = vmax.f32 %v341_v15, %v342_v18  ;;  %369 = vmax.xlane.f32.xlu0 %v368_v19  ;;  %v315_v21 = vpop.f32.mrb[6].mxu0 }
  0xf5   : > { %v317_v22 = vpop.f32.mrb[7].mxu0  ;;  %v344_v61 = vsub.f32 %v1153_v8, %v337_v60 }
  0xf6   : > { %v345_v23 = vsub.f32 %v299_v9, %v343_v20  ;;  %v598_v24 = vmax.f32 %v315_v21, %v317_v22  ;;  %v568_v20 = vrot.slane %v1157_v13, 4 }
  0xf7   : > { %v346_v62 = vmul.f32 1.442695, %v344_v61 }
  0xf8   : > { %v348_v25 = vmul.f32 1.442695, %v345_v23  ;;  %599 = vmax.xlane.f32.xlu1 %v598_v24  ;;  %v321_v26 = vpop.f32.mrb[8].mxu0 }
  0xf9   : > { %v323_v27 = vpop.f32.mrb[9].mxu0 }
  0xfa   : > { %1042 = vpow2.f32 %v348_v25  ;;  %383 = vmatprep.subr.mxu1 %v323_v27 }
  0xfb   : > { %384 = vmatpush1.xpose.msra.mxu1 %v321_v26 }
  0xfc   : > { %v327_v8 = vpop.f32.mrb[10].mxu0 }
 0x104   : > { %v1043_v28 = vpop.eup %1042 }
 0x105   : > { %v356_v29 = vrot.slane %v1043_v28, 4 }
 0x107   : > { %v357_v30 = vadd.f32 %v1043_v28, %v356_v29 }
 0x109   : > { %v358_v31 = vrot.slane %v357_v30, 2 }
 0x10b   : > { %v359_v32 = vadd.f32 %v358_v31, %v357_v30 }
 0x10d   : > { %v360_v33 = vrot.slane %v359_v32, 1 }
 0x10f   : > { %v361_v34 = vadd.f32 %v360_v33, %v359_v32 }
 0x111   : > { %1044 = vrcp.f32 %v361_v34 }
 0x11b   : > { %v1045_v35 = vpop.eup %1044 }
 0x11c   : > { %v365_v36 = vmul.f32 0.35355338, %v1045_v35 }
 0x11e   : > { %v367_v37 = vmul.f32 %v1043_v28, %v365_v36 }
 0x120   : > { %489 = vmatprep.subr.mxu1 %v367_v37 }
 0x181   : > { %v370_v38 = vpop.xlane.xlu0 %369 }
 0x182   : > { %v371_v39 = vsub.f32 %v309_v16, %v370_v38  ;;  %v372_v40 = vsub.f32 %v311_v17, %v370_v38  ;;  %v329_v17 = vpop.f32.mrb[11].mxu0 }
 0x184   : > { %v373_v41 = vmul.f32 1.442695, %v371_v39  ;;  %v375_v42 = vmul.f32 1.442695, %v372_v40 }
 0x185   : > { %v600_v43 = vpop.xlane.xlu1 %599 }
 0x186   : > { %1046 = vpow2.f32 %v373_v41  ;;  %v601_v44 = vsub.f32 %v315_v21, %v600_v43  ;;  %v602_v45 = vsub.f32 %v317_v22, %v600_v43  ;;  %v562_v21 = vrot.slane %v1155_v12, 4 }
 0x187   : > { %1048 = vpow2.f32 %v375_v42  ;;  %v569_v22 = vmax.f32 %v1157_v13, %v568_v20 }
 0x188   : > { %v603_v46 = vmul.f32 1.442695, %v601_v44  ;;  %v605_v47 = vmul.f32 1.442695, %v602_v45  ;;  %v563_v23 = vmax.f32 %v1155_v12, %v562_v21 }
 0x189   : > { %v570_v24 = vrot.slane %v569_v22, 2 }
 0x18a   : > { %1050 = vpow2.f32 %v603_v46  ;;  %v564_v25 = vrot.slane %v563_v23, 2 }
 0x18b   : > { %1052 = vpow2.f32 %v605_v47  ;;  %v571_v26 = vmax.f32 %v569_v22, %v570_v24 }
 0x18c   : > { %1054 = vpow2.f32 %v346_v62  ;;  %v565_v27 = vmax.f32 %v563_v23, %v564_v25 }
 0x18d   : > { %v572_v28 = vrot.slane %v571_v26, 1 }
 0x18e   : > { %v566_v29 = vrot.slane %v565_v27, 1 }
 0x18f   : > { %v573_v30 = vmax.f32 %v571_v26, %v572_v28 }
 0x190   : > { %v1047_v48 = vpop.eup %1046  ;;  %v567_v31 = vmax.f32 %v565_v27, %v566_v29 }
 0x191   : > { %v1049_v49 = vpop.eup %1048  ;;  %v575_v32 = vsub.f32 %v1157_v13, %v573_v30 }
 0x192   : > { %v377_v50 = vadd.f32 %v1049_v49, %v1047_v48  ;;  %v574_v33 = vsub.f32 %v1155_v12, %v567_v31 }
 0x193   : > { %v578_v34 = vmul.f32 1.442695, %v575_v32 }
 0x194   : > { %v1159_v51 = vpop.eup %1050  ;;  %378 = vadd.xlane.f32.xlu0 %v377_v50  ;;  %v576_v35 = vmul.f32 1.442695, %v574_v33  ;;  %v1083_v33 = vmov 2  }
 0x195   : > { %v1161_v52 = vpop.eup %1052 }
 0x196   : > { %v607_v53 = vadd.f32 %v1161_v52, %v1159_v51  ;;  %v1055_v63 = vpop.eup %1054 }
 0x197   : > { %v350_v1 = vrot.slane %v1055_v63, 4 }
 0x198   : > { %608 = vadd.xlane.f32.xlu1 %v607_v53 }
 0x199   : > { %v351_v2 = vadd.f32 %v1055_v63, %v350_v1 }
 0x19b   : > { %v352_v3 = vrot.slane %v351_v2, 2 }
 0x19d   : > { %v353_v4 = vadd.f32 %v352_v3, %v351_v2  ;;  %v791_v2 = vld [vmem:[%s1206_s3] sm:$0xf] }
 0x19f   : > { %v354_v5 = vrot.slane %v353_v4, 1 }
 0x1a1   : > { %v355_v6 = vadd.f32 %v354_v5, %v353_v4 }
 0x1a3   : > { %1056 = vrcp.f32 %v355_v6 }
 0x1ad   : > { %v1057_v9 = vpop.eup %1056 }
 0x1ae   : > { %v364_v10 = vmul.f32 0.35355338, %v1057_v9 }
 0x1b0   : > { %v366_v16 = vmul.f32 %v1055_v63, %v364_v10 }
 0x221   : > { %v379_v7 = vpop.xlane.xlu0 %378 }
 0x222   : > { %1058 = vrcp.f32 %v379_v7  ;;  %v792_v7 = vld [vmem:[%s1205_s2] sm:$0xf] }
 0x223   : > { %1060 = vpow2.f32 %v578_v34 }
 0x224   : > { %1062 = vpow2.f32 %v576_v35 }
 0x22c   : > { %v1059_v11 = vpop.eup %1058 }
 0x22d   : > { %v382_v14 = vmul.f32 %v1059_v11, %v1049_v49  ;;  %v381_v15 = vmul.f32 %v1059_v11, %v1047_v48  ;;  %v1061_v36 = vpop.eup %1060  ;;  %v609_v49 = vpop.xlane.xlu1 %608 }
 0x22e   : > { %v1063_v37 = vpop.eup %1062  ;;  %v586_v38 = vrot.slane %v1061_v36, 4 }
 0x22f   : > { %447 = vmatprep.mubr.f32.mxu1 %v382_v14  ;;  %v580_v39 = vrot.slane %v1063_v37, 4 }
 0x230   : > { %448 = vmatmul.mubr.f32.vlgmr.msra.gmra.mrb[0].mxu1 %v381_v15  ;;  %v587_v40 = vadd.f32 %v1061_v36, %v586_v38 }
 0x231   : > { %490 = vmatpush1.msra.mxu1 %v366_v16  ;;  %553 = vmatprep.mubr.f32.mxu1 %v1080_v0  ;;  %v581_v41 = vadd.f32 %v1063_v37, %v580_v39 }
 0x232   : > { %613 = vmatprep.subr.mxu1 %v329_v17  ;;  %v588_v42 = vrot.slane %v587_v40, 2  ;;  %v1082_v17 = vmov 1  }
 0x233   : > { %v582_v43 = vrot.slane %v581_v41, 2 }
 0x234   : > { %v589_v44 = vadd.f32 %v588_v42, %v587_v40 }
 0x235   : > { %v583_v45 = vadd.f32 %v582_v43, %v581_v41 }
 0x236   : > { %v590_v46 = vrot.slane %v589_v44, 1 }
 0x237   : > { %v584_v47 = vrot.slane %v583_v45, 1 }
 0x238   : > { %v591_v48 = vadd.f32 %v590_v46, %v589_v44 }
 0x239   : > { %v585_v13 = vadd.f32 %v584_v47, %v583_v45 }
 0x23a   : > { %1064 = vrcp.f32 %v591_v48 }
 0x23b   : > { %1066 = vrcp.f32 %v585_v13 }
 0x23c   : > { %1068 = vrcp.f32 %v609_v49 }
 0x244   : > { %v1065_v12 = vpop.eup %1064 }
 0x245   : > { %v1067_v50 = vpop.eup %1066  ;;  %v595_v54 = vmul.f32 0.35355338, %v1065_v12 }
 0x246   : > { %v1069_v53 = vpop.eup %1068  ;;  %v594_v57 = vmul.f32 0.35355338, %v1067_v50 }
 0x247   : > { %v612_v56 = vmul.f32 %v1069_v53, %v1161_v52  ;;  %v597_v58 = vmul.f32 %v1061_v36, %v595_v54  ;;  %v611_v59 = vmul.f32 %v1069_v53, %v1159_v51  ;;  %v1081_v51 = vmov 0  }
 0x248   : > { %v596_v60 = vmul.f32 %v1063_v37, %v594_v57 }
 0x303   : > { %v449_v18 = vpop.f32.mrb[0].mxu1 }
 0x304   : > { %453 = vxpose.xlu0.b32.start.end [1/1] (short) (narrow) %v449_v18, 8  ;;  %v451_v19 = vpop.f32.mrb[1].mxu1 }
 0x32d   : > { %1037 = vset.pattern.permute.xlu0 %v1081_v51 }
 0x32e   : > { %799 = vperm.xlu0 %1037, %v791_v2  }
 0x332   : > { %1040 = vset.pattern.permute.xlu0 %v1083_v33 }
 0x384   : > { %v469_v55 = vpop.trf.xlu0 }
 0x385   : > { %1008 = vmatmul.mubr.msk.f32.vlgmr.msra.gmra.mrb[2].mxu1 %vm485_vm2, %v469_v55 }
 0x386   : > { %614 = vmatpush1.xpose.msra.mxu1 %v327_v8  ;;  %677 = vmatprep.mubr.f32.mxu1 %v612_v56 }
 0x387   : > { %718 = vmatprep.subr.mxu1 %v597_v58 }
 0x389   : > { %678 = vmatmul.mubr.f32.vlgmr.msra.gmra.mrb[4].mxu1 %v611_v59 }
 0x38a   : > { %719 = vmatpush1.msra.mxu1 %v596_v60  ;;  %782 = vmatprep.mubr.f32.mxu1 %v1080_v0 }
 0x458   : > { %v555_v61 = vpop.f32.mrb[2].mxu1 }
 0x459   : > { %v557_v62 = vpop.f32.mrb[3].mxu1 }
 0x45c   : > { %v679_v63 = vpop.f32.mrb[4].mxu1 }
 0x45d   : > { %683 = vxpose.xlu1.b32.start.end [1/1] (short) (narrow) %v679_v63, 8  ;;  %v681_v1 = vpop.f32.mrb[5].mxu1 }
 0x47b   : > { %1038 = vset.pattern.permute.xlu1 %v1082_v17 }
 0x4dd   : > { %v699_v52 = vpop.trf.xlu1 }
 0x4de   : > { %1009 = vmatmul.mubr.msk.f32.vlgmr.msra.gmra.mrb[6].mxu1 %vm485_vm2, %v699_v52 }
 0x4df   : > { %870 = vmatprep.mubr.f32.mxu1 %v1080_v0  ;;  %v800_v0 = vpop.permute.xlu0 %799 }
 0x5b1   : > { %v784_v3 = vpop.f32.mrb[6].mxu1 }
 0x5b2   : > { %v1017_v4 = vpack.c.bf16 %v784_v3, %v555_v61  ;;  %v786_v5 = vpop.f32.mrb[7].mxu1 }
 0x5b3   : > { %v1015_v6 = vpack.c.bf16 %v786_v5, %v557_v62 }
 0x5b5   : > { %1016 = vmatprep.subr.bf16.mxu1 %v1015_v6 }
 0x5b6   : > { %1018 = vmatpush1.bf16.msra.mxu1 %v1017_v4 }
 0x5b9   : > { %1010 = vmatmul.mubr.msk.f32.vlgmr.msra.gmra.mrb[8].mxu1 %vm802_vm3, %v792_v7 }
 0x68c   : > { %v872_v9 = vpop.f32.mrb[8].mxu1 }
 0x68d   : > { %v873_v10 = vadd.f32 %v872_v9, %v800_v0  ;;  %v874_v11 = vpop.f32.mrb[9].mxu1 }
 0x68e   : > { %v875_v14 = vadd.f32 %v874_v11, %v800_v0 }
 0x68f   : > { %v877_v15 = vsel %vm226_vm0, %v873_v10, 0.0 }
 0x690   : > { %v878_v16 = vsel %vm226_vm0, %v875_v14, 0.0 }
 0x691   : > { %v879_v8 = vadd.f32 %v878_v16, %v877_v15 }
 0x693   : > { %880 = vadd.xlane.f32.xlu1 %v879_v8 }
 0x6a4   : > { %920 = vperm.xlu1 %1038, %v791_v2  }
 0x6a8   : > { %1039 = vset.pattern.permute.xlu1 %v1083_v33 }
 0x6a9   : > { %926 = vperm.xlu1 %1039, %v791_v2  }
 0x720   : > { %v881_v18 = vpop.xlane.xlu1 %880 }
 0x721   : > { %v882_v19 = vrot.slane %v881_v18, 4 }
 0x723   : > { %v883_v20 = vadd.f32 %v882_v19, %v881_v18 }
 0x724   : > { %v921_v43 = vpop.permute.xlu1 %920 }
 0x725   : > { %v884_v21 = vrot.slane %v883_v20, 2 }
 0x727   : > { %v885_v22 = vadd.f32 %v884_v21, %v883_v20 }
 0x728   : > { %v927_v47 = vpop.permute.xlu1 %926 }
 0x729   : > { %v886_v23 = vrot.slane %v885_v22, 1 }
 0x72b   : > { %v887_v24 = vadd.f32 %v886_v23, %v885_v22 }
 0x72d   : > { %1019 = vpush %v887_v24 }
 0x75e   : > { %s1020_s11 = spop %1019 }
 0x75f   : > { %s891_s12 = smul.f32 0.0009765625, %s1020_s11 }
 0x761   : > { %v892_v25 = vstv %s891_s12 }
 0x762   : > { %v893_v26 = vsub.f32 %v873_v10, %v892_v25  ;;  %v894_v27 = vsub.f32 %v875_v14, %v892_v25 }
 0x764   : > { %v895_v28 = vmul.f32 %v893_v26, %v893_v26  ;;  %v896_v29 = vmul.f32 %v894_v27, %v894_v27 }
 0x766   : > { %v897_v30 = vsel %vm226_vm0, %v895_v28, 0.0  ;;  %v898_v31 = vsel %vm226_vm0, %v896_v29, 0.0 }
 0x767   : > { %v899_v32 = vadd.f32 %v898_v31, %v897_v30 }
 0x769   : > { %900 = vadd.xlane.f32.xlu0 %v899_v32 }
 0x7f6   : > { %v901_v34 = vpop.xlane.xlu0 %900 }
 0x7f7   : > { %v902_v35 = vrot.slane %v901_v34, 4 }
 0x7f9   : > { %v903_v36 = vadd.f32 %v902_v35, %v901_v34 }
 0x7fb   : > { %v904_v37 = vrot.slane %v903_v36, 2 }
 0x7fd   : > { %v905_v38 = vadd.f32 %v904_v37, %v903_v36 }
 0x7ff   : > { %v906_v39 = vrot.slane %v905_v38, 1 }
 0x801   : > { %v907_v40 = vadd.f32 %v906_v39, %v905_v38 }
 0x803   : > { %1021 = vpush %v907_v40 }
 0x834   : > { %s1022_s13 = spop %1021 }
 0x835   : > { %s911_s14 = smul.f32 0.0009765625, %s1022_s13 }
 0x837   : > { %s912_s18 = sadd.f32 1e-05, %s911_s14 }
 0x839   : > { %v913_v41 = vstv %s912_s18 }
 0x83a   : > { %1070 = vrsqrt.f32 %v913_v41 }
 0x844   : > { %v1071_v42 = vpop.eup %1070 }
 0x845   : > { %1023 = vpush %v1071_v42 }
 0x876   : > { %s1024_s19 = spop %1023 }
 0x877   : > { %v916_v44 = vstv %s1024_s19 }
 0x878   : > { %v917_v45 = vmul.f32 %v916_v44, %v893_v26  ;;  %v918_v46 = vmul.f32 %v916_v44, %v894_v27 }
 0x87a   : > { %v923_v48 = vmul.f32 %v921_v43, %v917_v45  ;;  %v924_v13 = vmul.f32 %v921_v43, %v918_v46 }
 0x87c   : > { %v929_v49 = vadd.f32 %v927_v47, %v923_v48  ;;  %v930_v12 = vadd.f32 %v927_v47, %v924_v13 }
 0x87e   : > { %v933_v50 = vcombine.low %v929_v49, %v930_v12 }
 0x880   : > { %935 = vst [vmem:[%s197_s22] sm:$0xff] %v933_v50 }
 0x881 PF: > { %s14_s15 = sadd.s32 1, %s1078_s15  }
 0x882   : > { %p11_p4 = scmp.ge.s32.totalorder %s14_s15, 4  }
 0x884   :  { %13 = sbr.rel (!%p11_p4) target bundleno = 1 (0x1), region = 66 }

</bundles_post_ra>
